<compile_context>
chip_gen: v5e
topology: v5e:2x2
jax: 0.10.0
libtpu: 0.0.40
codegen_flags: <defaults>
</compile_context>

<pallas_src>
import math
import jax
import jax.numpy as jnp
from jax.experimental import pallas as pl
from jax.experimental.pallas import tpu as pltpu


_OUT_LANE_PAD = 8  # pad final-layer outputs to a multiple of 8 lanes (not 128)


def _round_up(n: int, m: int) -> int:
    return ((n + m - 1) // m) * m


def mlp_kernel(x_ref, w1_ref, b1_ref, w2_ref, b2_ref, w3_ref, b3_ref, o_ref):
    wdt = w1_ref.dtype  # weight dtype (f32 or bf16); matmul inputs cast to it.
    x = x_ref[...].astype(wdt)

    # Layer 1: Linear + ReLU  (accumulate in f32, elementwise in f32)
    h1 = jnp.dot(x, w1_ref[...], preferred_element_type=jnp.float32) + b1_ref[...]
    h1 = jnp.maximum(h1, 0.0)

    # Layer 2: Linear + ReLU
    h2 = jnp.dot(h1.astype(wdt), w2_ref[...],
                 preferred_element_type=jnp.float32) + b2_ref[...]
    h2 = jnp.maximum(h2, 0.0)

    # Final layer: Linear, no activation. Output padded only to 8 lanes.
    o_ref[...] = (jnp.dot(h2.astype(wdt), w3_ref[...],
                          preferred_element_type=jnp.float32)
                  + b3_ref[...]).astype(o_ref.dtype)


def prepare_params(params, weight_dtype=jnp.float32):
    """One-time parameter preparation (keep OUT of the per-call hot path).

    params: ((W1,b1),(W2,b2),(W3,b3)) with Wi in PyTorch [out,in] layout.
    Returns (kernel_params, out_dim):
      weights transposed to [in,out] (optionally bf16 -- MXU-native on
      v5e/v6e/v7x alike); the final layer is zero-padded to a multiple of 8
      output columns; biases kept 2D f32.
    """
    (w1, b1), (w2, b2), (w3, b3) = params
    out_dim = w3.shape[0]
    out_pad = _round_up(out_dim, _OUT_LANE_PAD)

    w1t = jnp.asarray(w1).T.astype(weight_dtype)
    w2t = jnp.asarray(w2).T.astype(weight_dtype)
    w3t = jnp.zeros((w3.shape[1], out_pad), weight_dtype)
    w3t = w3t.at[:, :out_dim].set(jnp.asarray(w3).T.astype(weight_dtype))

    b1r = jnp.asarray(b1).reshape(1, -1).astype(jnp.float32)
    b2r = jnp.asarray(b2).reshape(1, -1).astype(jnp.float32)
    b3r = jnp.zeros((1, out_pad), jnp.float32)
    b3r = b3r.at[:, :out_dim].set(jnp.asarray(b3).astype(jnp.float32))

    return (w1t, b1r, w2t, b2r, w3t, b3r), out_dim


def _choose_batch_tile(batch: int, tile_b: int) -> int:
    """Pick a sublane-aligned batch tile.

    * <= tile_b rows per tile (amortizes per-step overhead at the default 1024)
    * forces >= 2 grid steps for moderate batches so the "parallel" grid axis
      can actually be split across v7x's two TensorCores
    * wastes at most ~8 rows per tile (no 300->512 style blow-up)
    """
    n_tiles = pl.cdiv(batch, tile_b)
    if n_tiles == 1 and batch >= 16:
        n_tiles = 2
    return _round_up(-(-batch // n_tiles), 8)


def sign_recognizer_v1_forward(x, prepared, *, tile_b=1024):
    """x: [batch, L0] float32 (bf16 also accepted). prepared: prepare_params() output.

    Returns logits [batch, out_dim] (f32).  `tile_b` is worth sweeping
    (512-1024 is a good range for large batches).
    """
    kernel_params, out_dim = prepared
    w1t, b1r, w2t, b2r, w3t, b3r = kernel_params

    batch, l0 = x.shape
    out_pad = w3t.shape[1]

    tb = _choose_batch_tile(batch, tile_b)
    grid = (pl.cdiv(batch, tb),)   # ragged last tile handled by Pallas masking

    const = lambda i: (0, 0)  # weights/biases: resident in VMEM across all tiles

    out = pl.pallas_call(
        mlp_kernel,
        out_shape=jax.ShapeDtypeStruct((batch, out_pad), jnp.float32),
        grid=grid,
        in_specs=[
            pl.BlockSpec((tb, l0), lambda i: (i, 0)),   # x: tiled over batch
            pl.BlockSpec(w1t.shape, const),
            pl.BlockSpec(b1r.shape, const),
            pl.BlockSpec(w2t.shape, const),
            pl.BlockSpec(b2r.shape, const),
            pl.BlockSpec(w3t.shape, const),
            pl.BlockSpec(b3r.shape, const),
        ],
        out_specs=pl.BlockSpec((tb, out_pad), lambda i: (i, 0)),
        compiler_params=pltpu.CompilerParams(
            dimension_semantics=("parallel",)),      # v7x: split batch over 2 TCs
    )(x, w1t, b1r, w2t, b2r, w3t, b3r)

    # Near-free: out is only (batch, 8) f32.  Consumers that jit this forward
    # together with downstream ops will get the slice fused away entirely.
    return out[:, :out_dim]


def init_linear_params(key, in_features, out_features):
    """Deterministic init mimicking torch.nn.Linear default (uniform +-1/sqrt(fan_in))."""
    kw, kb = jax.random.split(key)
    bound = 1.0 / math.sqrt(in_features)
    w = jax.random.uniform(kw, (out_features, in_features), jnp.float32, -bound, bound)
    b = jax.random.uniform(kb, (out_features,), jnp.float32, -bound, bound)
    return w, b


def reference_forward(x, params):
    (w1, b1), (w2, b2), (w3, b3) = params
    h = jnp.maximum(x @ w1.T + b1, 0.0)
    h = jnp.maximum(h, 0.0)  # relu after Dropout in the torch loop (identity at eval)
    h = jnp.maximum(h @ w2.T + b2, 0.0)
    h = jnp.maximum(h, 0.0)
    return h @ w3.T + b3


if __name__ == "__main__":
    # ModelInfo.layers = [nb_of_memory_frame * n_active_fields * 3] + [128, 64] + [n_labels]
    # e.g. memory_frame=2, 8 active gesture fields -> input dim 48; 6 output labels.
    layers = [48, 128, 64, 6]

    key = jax.random.PRNGKey(0)
    kx1, kx2, k1, k2, k3 = jax.random.split(key, 5)

    params = (
        init_linear_params(k1, layers[0], layers[1]),
        init_linear_params(k2, layers[1], layers[2]),
        init_linear_params(k3, layers[2], layers[3]),
    )

    # ---- Case 1: tiny batch (batch=2), f32 weights, single ragged tile ----------
    batch = 2
    x_small = jax.random.normal(kx1, (batch, layers[0]), jnp.float32)
    prepared_f32 = prepare_params(params, weight_dtype=jnp.float32)

    out = jax.block_until_ready(sign_recognizer_v1_forward(x_small, prepared_f32))
    ref = reference_forward(x_small, params)
    assert out.shape == (batch, layers[-1])
    assert jnp.allclose(out, ref, atol=1e-4, rtol=1e-4), "f32 small-batch mismatch"

    # ---- Case 2: moderate batch, default tile_b -> forced 2-tile split (v7x path),
    #      ragged last tile, no wrapper-side pad ----------------------------------
    batch2 = 300
    x_big = jax.random.normal(kx2, (batch2, layers[0]), jnp.float32)
    ref_big = reference_forward(x_big, params)

    out_big = jax.block_until_ready(sign_recognizer_v1_forward(x_big, prepared_f32))
    assert out_big.shape == (batch2, layers[-1])
    assert jnp.allclose(out_big, ref_big, atol=1e-4, rtol=1e-4), "f32 2-tile mismatch"

    # ---- Case 3: explicit small tile_b -> 3 grid steps, last one partial --------
    out_grid = jax.block_until_ready(
        sign_recognizer_v1_forward(x_big, prepared_f32, tile_b=128))
    assert out_grid.shape == (batch2, layers[-1])
    assert jnp.allclose(out_grid, ref_big, atol=1e-4, rtol=1e-4), "f32 grid mismatch"

    # ---- Case 4: bf16 weight path (fast on v5e/v6e/v7x alike), loose tolerance --
    prepared_bf16 = prepare_params(params, weight_dtype=jnp.bfloat16)
    out_bf16 = jax.block_until_ready(
        sign_recognizer_v1_forward(x_big, prepared_bf16, tile_b=128))
    assert out_bf16.shape == (batch2, layers[-1])
    assert bool(jnp.all(jnp.isfinite(out_bf16)))
    assert jnp.allclose(out_bf16, ref_big, atol=1.5e-1, rtol=1e-1), "bf16 mismatch"

    print("KERNEL_OK")
</pallas_src>

<mosaic_0001>
module attributes {stable_mosaic.version = 11 : i64} {
  func.func @mlp_kernel(%arg0: i32, %arg1: memref<8x48xf32, #tpu.memory_space<vmem>>, %arg2: memref<48x128xf32, #tpu.memory_space<vmem>>, %arg3: memref<1x128xf32, #tpu.memory_space<vmem>>, %arg4: memref<128x64xf32, #tpu.memory_space<vmem>>, %arg5: memref<1x64xf32, #tpu.memory_space<vmem>>, %arg6: memref<64x8xf32, #tpu.memory_space<vmem>>, %arg7: memref<1x8xf32, #tpu.memory_space<vmem>>, %arg8: memref<8x8xf32, #tpu.memory_space<vmem>>) attributes {dimension_semantics = [#tpu.dimension_semantics<parallel>], iteration_bounds = array<i64: 1>, scalar_prefetch = 0 : i64, scratch_operands = 0 : i64, tpu.core_type = #tpu.core_type<tc>, window_params = [{transform_indices = @transform_0, window_bounds = array<i64: 8, 48>}, {pipeline_mode = #tpu.pipeline_mode<synchronous>, transform_indices = @transform_1, window_bounds = array<i64: 48, 128>}, {pipeline_mode = #tpu.pipeline_mode<synchronous>, transform_indices = @transform_2, window_bounds = array<i64: 1, 128>}, {pipeline_mode = #tpu.pipeline_mode<synchronous>, transform_indices = @transform_3, window_bounds = array<i64: 128, 64>}, {pipeline_mode = #tpu.pipeline_mode<synchronous>, transform_indices = @transform_4, window_bounds = array<i64: 1, 64>}, {pipeline_mode = #tpu.pipeline_mode<synchronous>, transform_indices = @transform_5, window_bounds = array<i64: 64, 8>}, {pipeline_mode = #tpu.pipeline_mode<synchronous>, transform_indices = @transform_6, window_bounds = array<i64: 1, 8>}, {transform_indices = @transform_7, window_bounds = array<i64: 8, 8>}]} {
    %c0 = arith.constant 0 : index
    %c0_0 = arith.constant 0 : index
    %0 = vector.load %arg1[%c0, %c0_0] : memref<8x48xf32, #tpu.memory_space<vmem>>, vector<8x48xf32>
    %c0_1 = arith.constant 0 : index
    %c0_2 = arith.constant 0 : index
    %1 = vector.load %arg2[%c0_1, %c0_2] : memref<48x128xf32, #tpu.memory_space<vmem>>, vector<48x128xf32>
    %cst = arith.constant dense<0.000000e+00> : vector<8x128xf32>
    %2 = tpu.matmul %0, %1, %cst {dimension_numbers = #tpu.dot_dimension_numbers<[1], [0], [0], [1], [0, 0, 1, 1], [], []>} : vector<8x48xf32>, vector<48x128xf32>, vector<8x128xf32> -> vector<8x128xf32>
    %c0_3 = arith.constant 0 : index
    %c0_4 = arith.constant 0 : index
    %3 = vector.load %arg3[%c0_3, %c0_4] : memref<1x128xf32, #tpu.memory_space<vmem>>, vector<1x128xf32>
    %4 = vector.broadcast %3 : vector<1x128xf32> to vector<8x128xf32>
    %5 = arith.addf %2, %4 : vector<8x128xf32>
    %cst_5 = arith.constant 0.000000e+00 : f32
    %6 = vector.broadcast %cst_5 : f32 to vector<8x128xf32>
    %7 = arith.maximumf %5, %6 : vector<8x128xf32>
    %c0_6 = arith.constant 0 : index
    %c0_7 = arith.constant 0 : index
    %8 = vector.load %arg4[%c0_6, %c0_7] : memref<128x64xf32, #tpu.memory_space<vmem>>, vector<128x64xf32>
    %cst_8 = arith.constant dense<0.000000e+00> : vector<8x64xf32>
    %9 = tpu.matmul %7, %8, %cst_8 {dimension_numbers = #tpu.dot_dimension_numbers<[1], [0], [0], [1], [0, 0, 1, 1], [], []>} : vector<8x128xf32>, vector<128x64xf32>, vector<8x64xf32> -> vector<8x64xf32>
    %c0_9 = arith.constant 0 : index
    %c0_10 = arith.constant 0 : index
    %10 = vector.load %arg5[%c0_9, %c0_10] : memref<1x64xf32, #tpu.memory_space<vmem>>, vector<1x64xf32>
    %11 = vector.broadcast %10 : vector<1x64xf32> to vector<8x64xf32>
    %12 = arith.addf %9, %11 : vector<8x64xf32>
    %cst_11 = arith.constant 0.000000e+00 : f32
    %13 = vector.broadcast %cst_11 : f32 to vector<8x64xf32>
    %14 = arith.maximumf %12, %13 : vector<8x64xf32>
    %c0_12 = arith.constant 0 : index
    %c0_13 = arith.constant 0 : index
    %15 = vector.load %arg6[%c0_12, %c0_13] : memref<64x8xf32, #tpu.memory_space<vmem>>, vector<64x8xf32>
    %cst_14 = arith.constant dense<0.000000e+00> : vector<8x8xf32>
    %16 = tpu.matmul %14, %15, %cst_14 {dimension_numbers = #tpu.dot_dimension_numbers<[1], [0], [0], [1], [0, 0, 1, 1], [], []>} : vector<8x64xf32>, vector<64x8xf32>, vector<8x8xf32> -> vector<8x8xf32>
    %c0_15 = arith.constant 0 : index
    %c0_16 = arith.constant 0 : index
    %17 = vector.load %arg7[%c0_15, %c0_16] : memref<1x8xf32, #tpu.memory_space<vmem>>, vector<1x8xf32>
    %18 = vector.broadcast %17 : vector<1x8xf32> to vector<8x8xf32>
    %19 = arith.addf %16, %18 : vector<8x8xf32>
    %c0_17 = arith.constant 0 : index
    %c0_18 = arith.constant 0 : index
    %20 = vector.load %arg8[%c0_17, %c0_18] : memref<8x8xf32, #tpu.memory_space<vmem>>, vector<8x8xf32>
    tpu.vector_store %arg8[%c0_17, %c0_18], %19 {strides = array<i32>} : memref<8x8xf32, #tpu.memory_space<vmem>>, vector<8x8xf32>,
    return
  }
  func.func @transform_0(%arg0: i32) -> (i32, i32) {
    %c0_i32 = arith.constant 0 : i32
    %c0_i32_0 = arith.constant 0 : i32
    return %arg0, %c0_i32 : i32, i32
  }
  func.func @transform_1(%arg0: i32) -> (i32, i32) {
    %c0_i32 = arith.constant 0 : i32
    %c0_i32_0 = arith.constant 0 : i32
    %c0_i32_1 = arith.constant 0 : i32
    return %c0_i32, %c0_i32_0 : i32, i32
  }
  func.func @transform_2(%arg0: i32) -> (i32, i32) {
    %c0_i32 = arith.constant 0 : i32
    %c0_i32_0 = arith.constant 0 : i32
    %c0_i32_1 = arith.constant 0 : i32
    return %c0_i32, %c0_i32_0 : i32, i32
  }
  func.func @transform_3(%arg0: i32) -> (i32, i32) {
    %c0_i32 = arith.constant 0 : i32
    %c0_i32_0 = arith.constant 0 : i32
    %c0_i32_1 = arith.constant 0 : i32
    return %c0_i32, %c0_i32_0 : i32, i32
  }
  func.func @transform_4(%arg0: i32) -> (i32, i32) {
    %c0_i32 = arith.constant 0 : i32
    %c0_i32_0 = arith.constant 0 : i32
    %c0_i32_1 = arith.constant 0 : i32
    return %c0_i32, %c0_i32_0 : i32, i32
  }
  func.func @transform_5(%arg0: i32) -> (i32, i32) {
    %c0_i32 = arith.constant 0 : i32
    %c0_i32_0 = arith.constant 0 : i32
    %c0_i32_1 = arith.constant 0 : i32
    return %c0_i32, %c0_i32_0 : i32, i32
  }
  func.func @transform_6(%arg0: i32) -> (i32, i32) {
    %c0_i32 = arith.constant 0 : i32
    %c0_i32_0 = arith.constant 0 : i32
    %c0_i32_1 = arith.constant 0 : i32
    return %c0_i32, %c0_i32_0 : i32, i32
  }
  func.func @transform_7(%arg0: i32) -> (i32, i32) {
    %c0_i32 = arith.constant 0 : i32
    %c0_i32_0 = arith.constant 0 : i32
    return %arg0, %c0_i32 : i32, i32
  }
}

</mosaic_0001>

<bundles_post_ra>
// kernel: tpu_custom_call.1
= control target key start
LH: loop header
LB: loop body
LE: loop exit
PB: predicated region body
PF: predicated region fallthrough
CT: control target
= control target key end

     0   :  { %12 = vsyncpa [#allocation3], 0  ;;  %vm38_vm0 = vcmask 392192   ;;  %vm116_vm1 = vcmask 523264   ;;  %vm140_vm2 = vcmask 64512   ;;  %s342_s0 = inlined_call_operand.vmem [shape: f32[2,48], index: 0, kind: input, shape index: {}]   ;;  %s343_s1 = inlined_call_operand.vmem [shape: f32[48,128], index: 1, kind: input, shape index: {}]   ;;  %s344_s2 = inlined_call_operand.vmem [shape: f32[1,128], index: 2, kind: input, shape index: {}]   ;;  %s345_s3 = inlined_call_operand.vmem [shape: f32[128,64], index: 3, kind: input, shape index: {}]   ;;  %s346_s4 = inlined_call_operand.vmem [shape: f32[1,64], index: 4, kind: input, shape index: {}]   ;;  %s347_s5 = inlined_call_operand.vmem [shape: f32[64,8], index: 5, kind: input, shape index: {}]   ;;  %s348_s6 = inlined_call_operand.vmem [shape: f32[1,8], index: 6, kind: input, shape index: {}]   ;;  %s349_s7 = inlined_call_operand.hbm [shape: f32[2,8], index: 7, kind: output, shape index: {}]  }
   0x1   :  { %v33_v0 = vld [vmem:[%s343_s1 + $0x28] sm:$0xff]  ;;  %v32_v1 = vld [vmem:[%s343_s1 + $0x20] sm:$0xff]  ;;  %v31_v2 = vld [vmem:[%s343_s1 + $0x18] sm:$0xff] }
   0x2   :  { %52 = vmatpush.msra.mxu0 %v33_v0  ;;  %v78_v3 = vld [vmem:[%s345_s3 + $0x78] sm:$0xff]  ;;  %v77_v4 = vld [vmem:[%s345_s3 + $0x70] sm:$0xff]  ;;  %v76_v6 = vld [vmem:[%s345_s3 + $0x68] sm:$0xff] }
   0x3   :  { %83 = vmatpush.msra.mxu1 %v78_v3  ;;  %v30_v5 = vld [vmem:[%s343_s1 + $0x10] sm:$0xff]  ;;  %v29_v7 = vld [vmem:[%s343_s1 + $0x8] sm:$0xff]  ;;  %v75_v8 = vld [vmem:[%s345_s3 + $0x60] sm:$0xff] }
   0x4   :  { %53 = vmatpush.msra.mxu0 %v32_v1  ;;  %v28_v9 = vld [vmem:[%s343_s1] sm:$0xff]  ;;  %v74_v10 = vld [vmem:[%s345_s3 + $0x58] sm:$0xff]  ;;  %v73_v12 = vld [vmem:[%s345_s3 + $0x50] sm:$0xff] }
   0x5   :  { %84 = vmatpush.msra.mxu1 %v77_v4  ;;  %v27_v11 = vld [vmem:[%s342_s0] sm:$0xff]  ;;  %v72_v13 = vld [vmem:[%s345_s3 + $0x48] sm:$0xff]  ;;  %v70_v15 = vld [vmem:[%s345_s3 + $0x38] sm:$0xff] }
   0x6   :  { %54 = vmatpush.msra.mxu0 %v31_v2  ;;  %v71_v14 = vld [vmem:[%s345_s3 + $0x40] sm:$0xff]  ;;  %v69_v16 = vld [vmem:[%s345_s3 + $0x30] sm:$0xff]  ;;  %v68_v17 = vld [vmem:[%s345_s3 + $0x28] sm:$0xff] }
   0x7   :  { %85 = vmatpush.msra.mxu1 %v76_v6  ;;  %v67_v18 = vld [vmem:[%s345_s3 + $0x20] sm:$0xff]  ;;  %v66_v19 = vld [vmem:[%s345_s3 + $0x18] sm:$0xff]  ;;  %v65_v20 = vld [vmem:[%s345_s3 + $0x10] sm:$0xff] }
   0x8   :  { %55 = vmatpush.msra.mxu0 %v30_v5  ;;  %v64_v21 = vld [vmem:[%s345_s3 + $0x8] sm:$0xff]  ;;  %v63_v22 = vld [vmem:[%s345_s3] sm:$0xff]  ;;  %v111_v23 = vld [vmem:[%s347_s5 + $0x38] sm:$0xff] }
   0x9   :  { %86 = vmatpush.msra.mxu1 %v75_v8  ;;  %v110_v24 = vld [vmem:[%s347_s5 + $0x30] sm:$0xff]  ;;  %128 = vmatpush.msra.mxu2 %v111_v23  ;;  %v109_v25 = vld [vmem:[%s347_s5 + $0x28] sm:$0xff]  ;;  %v108_v26 = vld [vmem:[%s347_s5 + $0x20] sm:$0xff] }
   0xa   :  { %56 = vmatpush.msra.mxu0 %v29_v7  ;;  %v107_v27 = vld [vmem:[%s347_s5 + $0x18] sm:$0xff]  ;;  %v165_v28 = vld [vmem:[%s344_s2] ss:$0 sm:$0xff]  ;;  %v106_v32 = vld [vmem:[%s347_s5 + $0x10] sm:$0xff] }
   0xb   :  { %87 = vmatpush.msra.mxu1 %v74_v10  ;;  %129 = vmatpush.msra.mxu2 %v110_v24  ;;  %v105_v33 = vld [vmem:[%s347_s5 + $0x8] sm:$0xff]  ;;  %v104_v34 = vld [vmem:[%s347_s5] sm:$0xff] }
   0xc   :  { %57 = vmatpush.msra.mxu0 %v28_v9  ;;  %v166_v35 = vld [vmem:[%s346_s4] ss:$0 sm:$0xff] }
   0xd   :  { %160 = vmatmul.msk.f32.vlgmr.msra.gmra.mxu0 %vm38_vm0, %v27_v11  ;;  %88 = vmatpush.msra.mxu1 %v73_v12  ;;  %v167_v39 = vld [vmem:[%s348_s6] ss:$0 sm:$0xff] }
   0xe   :  { %130 = vmatpush.msra.mxu2 %v109_v25 }
   0xf   :  { %89 = vmatpush.msra.mxu1 %v72_v13 }
  0x10   :  { %131 = vmatpush.msra.mxu2 %v108_v26 }
  0x11   :  { %90 = vmatpush.msra.mxu1 %v71_v14 }
  0x12   :  { %132 = vmatpush.msra.mxu2 %v107_v27 }
  0x13   :  { %91 = vmatpush.msra.mxu1 %v70_v15 }
  0x14   :  { %133 = vmatpush.msra.mxu2 %v106_v32 }
  0x15   :  { %92 = vmatpush.msra.mxu1 %v69_v16 }
  0x16   :  { %134 = vmatpush.msra.mxu2 %v105_v33 }
  0x17   :  { %93 = vmatpush.msra.mxu1 %v68_v17 }
  0x18   :  { %135 = vmatpush.msra.mxu2 %v104_v34 }
  0x19   :  { %94 = vmatpush.msra.mxu1 %v67_v18 }
  0x1b   :  { %95 = vmatpush.msra.mxu1 %v66_v19 }
  0x1d   :  { %96 = vmatpush.msra.mxu1 %v65_v20 }
  0x1f   :  { %97 = vmatpush.msra.mxu1 %v64_v21 }
  0x21   :  { %98 = vmatpush.msra.mxu1 %v63_v22 }
  0x8a   :  { %v59_v29 = vpop.f32.mrf.mxu0 }
  0x8b   :  { %v60_v30 = vadd.f32 %v165_v28, %v59_v29 }
  0x8d   :  { %v62_v31 = vmax.f32 %v60_v30, 0.0 }
  0x8f   :  { %99 = vmatmul.f32.vlgmr.msra.gmra.mxu1 %v62_v31 }
 0x10c   :  { %v100_v36 = vpop.f32.mrf.mxu1 }
 0x10d   :  { %v101_v37 = vadd.f32 %v166_v35, %v100_v36 }
 0x10f   :  { %v103_v38 = vmax.f32 %v101_v37, 0.0 }
 0x111   :  { %161 = vmatmul.msk.f32.vlgmr.msra.gmra.mxu2 %vm116_vm1, %v103_v38 }
 0x194   :  { %v137_v40 = vpop.f32.mrf.mxu2 }
 0x195   :  { %v138_v41 = vadd.f32 %v167_v39, %v137_v40 }
 0x197   :  { %141 = vst.msk [vmem:[#allocation2] sm:$0xff] %vm140_vm2, %v138_v41 }
 0x198   :  { %145 = vsyncadd [#allocation3], 96  ;;  %s148_s18 = sshll.u32 %s349_s7, 4  ;;  %s194_s19 = smov [#allocation2]   ;;  %s149_s18 = int_to_ptr.hbm [resolvable:$true] %s148_s18 }
 0x199   :  { %s146_s4 = sshll.u32 %s194_s19, 4  ;;  %s195_s20 = smov 32   ;;  %s147_s4 = int_to_ptr.vmem [resolvable:$true] %s146_s4 }
 0x19a   :  { %s196_s21 = smov 2  }
 0x19b   :  { %154 = dma.vmem_to_hbm [thread:$0]  %s147_s4, 32, %s149_s18, [#allocation3], %s195_s20, %s195_s20, %s196_s21  }
 0x19c   :  { %192 = dma.done.wait [#allocation3], 128  }
 0x19d   :  { %193 = vsyncadd [#allocation3], 4294967168 }
 0x19e   :  { %159 = vsyncpa [#allocation3], 1 }

</bundles_post_ra>
